<compile_context>
chip_gen: v7x
topology: tpu7x:2x2x1
jax: 0.10.0
libtpu: 0.0.40
codegen_flags: <defaults>
</compile_context>

<pallas_src>
import functools

import jax
import jax.numpy as jnp
from jax import lax
from jax.experimental import pallas as pl
from jax.experimental.pallas import tpu as pltpu


def _lstm_recurrent_kernel(x_ref, wih_ref, whh_ref, bias_ref, out_ref,
                           xg_scr, h_scr, c_scr,
                           *, t_total, t_chunk, batch_pad, hidden, needs_mask):
    """One grid step == one chunk of `t_chunk` timesteps.

    x_ref   : (t_chunk*B_pad, E) bf16   time-major embeddings for this chunk
    wih_ref : (E, 4H) bf16              input weights   (resident, single-buffered)
    whh_ref : (H, 4H) bf16              recurrent weights (resident, single-buffered)
    bias_ref: (1, 4H) f32               b_ih + b_hh     (resident, single-buffered)
    out_ref : (B_pad, H) f32            h_T, written on the last chunk only
    xg_scr  : (t_chunk*B_pad, 4H) f32   per-chunk input projection
    h_scr/c_scr : (B_pad, H) f32        recurrent state, persists across chunks
    """
    ci = pl.program_id(0)
    last = pl.num_programs(0) - 1

    @pl.when(ci == 0)
    def _():
        h_scr[...] = jnp.zeros_like(h_scr)
        c_scr[...] = jnp.zeros_like(c_scr)

    # Whole-chunk input projection: ONE large MXU matmul off the serial chain
    # (replaces the old (T, B, 4H) HBM round-trip of precomputed gate inputs).
    xg_scr[...] = (
        jnp.dot(x_ref[...], wih_ref[...], preferred_element_type=jnp.float32)
        + bias_ref[...])

    def run_steps(masked):
        def step(s, carry):
            h, c = carry
            row = pl.multiple_of(s * batch_pad, batch_pad)
            gates = xg_scr[pl.ds(row, batch_pad), :] + jnp.dot(
                h.astype(whh_ref.dtype), whh_ref[...],
                preferred_element_type=jnp.float32)
            i_g = jax.nn.sigmoid(gates[:, 0 * hidden:1 * hidden])
            f_g = jax.nn.sigmoid(gates[:, 1 * hidden:2 * hidden])
            g_g = jnp.tanh(gates[:, 2 * hidden:3 * hidden])
            o_g = jax.nn.sigmoid(gates[:, 3 * hidden:4 * hidden])
            c_new = f_g * c + i_g * g_g
            h_new = o_g * jnp.tanh(c_new)
            if masked:
                # Only the final chunk can contain padded out-of-range steps.
                valid = ci * t_chunk + s < t_total
                h_new = jnp.where(valid, h_new, h)
                c_new = jnp.where(valid, c_new, c)
            return h_new, c_new

        h, c = lax.fori_loop(0, t_chunk, step, (h_scr[...], c_scr[...]),
                             unroll=min(8, t_chunk))
        h_scr[...] = h
        c_scr[...] = c

    if needs_mask:
        # Pay the two per-step selects only in the last (padded) chunk.
        @pl.when(ci != last)
        def _():
            run_steps(False)

        @pl.when(ci == last)
        def _():
            run_steps(True)
    else:
        run_steps(False)

    @pl.when(ci == last)
    def _():
        out_ref[...] = h_scr[...]


def lstm_classifier_forward(x_ids, emb_table, w_ih, w_hh, b_ih, b_hh,
                            w_fc, b_fc, *, t_chunk=None):
    """x_ids: (B, T) int32. Returns sigmoid(fc(h_T)) of shape (B, O), float32."""
    B, T = x_ids.shape
    E = emb_table.shape[1]
    H = w_hh.shape[1]
    O = w_fc.shape[0]

    B_pad = max(8, ((B + 7) // 8) * 8)

    if t_chunk is None:
        # Size the chunk from a ~20 MiB budget: per-timestep VMEM is the
        # double-buffered bf16 x-stream plus the f32 xg scratch.
        per_step = 2 * B_pad * E * 2 + B_pad * 4 * H * 4
        t_chunk = int(max(8, min(256, (20 << 20) // max(per_step, 1))))
    t_chunk = max(1, min(t_chunk, T))
    T_pad = ((T + t_chunk - 1) // t_chunk) * t_chunk
    num_chunks = T_pad // t_chunk

    # ---- XLA glue: embedding gather (data-dependent) + time-major layout ----
    # Stream the small (T, B, E) embeddings in bf16; the input projection runs
    # in-kernel, so no (T, B, 4H) tensor is ever written to / read from HBM.
    x_emb = emb_table.astype(jnp.bfloat16)[x_ids]            # (B, T, E)
    x_tm = jnp.transpose(x_emb, (1, 0, 2))                   # (T, B, E)
    x_tm = jnp.pad(x_tm, ((0, T_pad - T), (0, B_pad - B), (0, 0)))
    x_tm = x_tm.reshape(T_pad * B_pad, E)                    # lane-dense 2D stream

    wih_t = w_ih.T.astype(jnp.bfloat16)                      # (E, 4H)
    whh_t = w_hh.T.astype(jnp.bfloat16)                      # (H, 4H)
    bias = (b_ih + b_hh).astype(jnp.float32).reshape(1, 4 * H)

    # ---- explicit VMEM budget -> scoped limit --------------------------------
    vmem_need = (
        2 * t_chunk * B_pad * E * 2          # x stream, double-buffered, bf16
        + (E + H) * 4 * H * 2                # W_ih^T / W_hh^T, single-buffered
        + 4 * H * 4                          # bias
        + t_chunk * B_pad * 4 * H * 4        # xg scratch, f32
        + 2 * B_pad * H * 4                  # h / c state
        + 2 * B_pad * H * 4                  # output block
    )
    vmem_limit = int(min(64 << 20, max(32 << 20, 2 * vmem_need)))

    kernel = functools.partial(
        _lstm_recurrent_kernel,
        t_total=T, t_chunk=t_chunk, batch_pad=B_pad, hidden=H,
        needs_mask=(T_pad != T),
    )

    h_last = pl.pallas_call(
        kernel,
        out_shape=jax.ShapeDtypeStruct((B_pad, H), jnp.float32),
        grid_spec=pltpu.PrefetchScalarGridSpec(
            num_scalar_prefetch=0,
            grid=(num_chunks,),
            in_specs=[
                pl.BlockSpec((t_chunk * B_pad, E), lambda c: (c, 0)),
                pl.BlockSpec((E, 4 * H), lambda c: (0, 0),
                             pipeline_mode=pl.Buffered(1)),
                pl.BlockSpec((H, 4 * H), lambda c: (0, 0),
                             pipeline_mode=pl.Buffered(1)),
                pl.BlockSpec((1, 4 * H), lambda c: (0, 0),
                             pipeline_mode=pl.Buffered(1)),
            ],
            out_specs=pl.BlockSpec((B_pad, H), lambda c: (0, 0)),
            scratch_shapes=[
                pltpu.VMEM((t_chunk * B_pad, 4 * H), jnp.float32),  # xg
                pltpu.VMEM((B_pad, H), jnp.float32),                # h
                pltpu.VMEM((B_pad, H), jnp.float32),                # c
            ],
        ),
        compiler_params=pltpu.CompilerParams(
            dimension_semantics=("arbitrary",),      # serial recurrence over time
            vmem_limit_bytes=vmem_limit,
        ),
    )(x_tm, wih_t, whh_t, bias)

    # TODO(synk): on v7x, add a leading "parallel" grid axis splitting the
    # padded batch into 2 groups to use both TensorCores (skipped: 1 TC on
    # v5e/v6e and B_pad=8 in this demo).
    # TODO(synk): weight-stationary MXU driving (pltpu.matmul_push_rhs /
    # matmul_acc_lhs / matmul_pop) to keep W_hh resident across timesteps.

    # ---- epilogue in XLA: O=1 would force a lane-1 masked store in-kernel ----
    h_t = h_last[:B].astype(jnp.float32)                     # drop padded rows
    return jax.nn.sigmoid(h_t @ w_fc.T.astype(jnp.float32) + b_fc.reshape(1, O))


def _reference_forward(x_ids, emb_table, w_ih, w_hh, b_ih, b_hh, w_fc, b_fc):
    """Pure-JAX f32 reference matching torch.nn.LSTM semantics (gate order i,f,g,o)."""
    x_emb = emb_table[x_ids]                                 # (B, T, E)
    B, T, E = x_emb.shape
    H = w_hh.shape[1]
    h = jnp.zeros((B, H), jnp.float32)
    c = jnp.zeros((B, H), jnp.float32)

    def step(carry, x_t):
        h, c = carry
        gates = x_t @ w_ih.T + b_ih + h @ w_hh.T + b_hh
        i = jax.nn.sigmoid(gates[:, 0 * H:1 * H])
        f = jax.nn.sigmoid(gates[:, 1 * H:2 * H])
        g = jnp.tanh(gates[:, 2 * H:3 * H])
        o = jax.nn.sigmoid(gates[:, 3 * H:4 * H])
        c = f * c + i * g
        h = o * jnp.tanh(c)
        return (h, c), None

    (h, c), _ = jax.lax.scan(step, (h, c), jnp.transpose(x_emb, (1, 0, 2)))
    return jax.nn.sigmoid(h @ w_fc.T + b_fc)


if __name__ == "__main__":
    # Small deterministic config (H=128 keeps gate slices 128-lane aligned).
    VOCAB, E, H, O = 50, 32, 128, 1

    key = jax.random.PRNGKey(0)
    ks = jax.random.split(key, 8)

    emb_table = jax.random.normal(ks[0], (VOCAB, E), jnp.float32) * 0.1
    emb_table = emb_table.at[0].set(0.0)                     # padding_idx=0 row
    w_ih = jax.random.normal(ks[1], (4 * H, E), jnp.float32) * 0.1
    w_hh = jax.random.normal(ks[2], (4 * H, H), jnp.float32) * 0.1
    b_ih = jax.random.normal(ks[3], (4 * H,), jnp.float32) * 0.1
    b_hh = jax.random.normal(ks[4], (4 * H,), jnp.float32) * 0.1
    w_fc = jax.random.normal(ks[5], (O, H), jnp.float32) * 0.1
    b_fc = jax.random.normal(ks[6], (O,), jnp.float32) * 0.1

    # Three cases: multi-chunk (no mask), batch/time padding + last-chunk mask,
    # and the auto-sized single-chunk default.
    for (B, T, t_chunk) in [(2, 16, 4), (3, 13, 8), (2, 16, None)]:
        x_ids = jax.random.randint(jax.random.fold_in(ks[7], T),
                                   (B, T), 0, VOCAB, dtype=jnp.int32)

        out = lstm_classifier_forward(x_ids, emb_table, w_ih, w_hh, b_ih, b_hh,
                                      w_fc, b_fc, t_chunk=t_chunk)
        out = jax.block_until_ready(out)

        ref = _reference_forward(x_ids, emb_table, w_ih, w_hh, b_ih, b_hh,
                                 w_fc, b_fc)
        assert out.shape == (B, O)
        # bf16 matmul operands (f32 accumulate) -> relaxed tolerance vs f32 ref.
        assert jnp.allclose(out, ref, atol=2e-2, rtol=0.0), (out, ref)

    print("KERNEL_OK")
</pallas_src>

<mosaic_0001>
module attributes {stable_mosaic.version = 11 : i64} {
  func.func @_lstm_recurrent_kernel(%arg0: i32, %arg1: memref<32x32xbf16, #tpu.memory_space<vmem>>, %arg2: memref<32x512xbf16, #tpu.memory_space<vmem>>, %arg3: memref<128x512xbf16, #tpu.memory_space<vmem>>, %arg4: memref<1x512xf32, #tpu.memory_space<vmem>>, %arg5: memref<8x128xf32, #tpu.memory_space<vmem>>, %arg6: memref<32x512xf32, #tpu.memory_space<vmem>>, %arg7: memref<8x128xf32, #tpu.memory_space<vmem>>, %arg8: memref<8x128xf32, #tpu.memory_space<vmem>>) attributes {dimension_semantics = [#tpu.dimension_semantics<arbitrary>], iteration_bounds = array<i64: 4>, scalar_prefetch = 0 : i64, scratch_operands = 3 : i64, tpu.core_type = #tpu.core_type<tc>, window_params = [{transform_indices = @transform_0, window_bounds = array<i64: 32, 32>}, {pipeline_mode = #tpu.pipeline_mode<synchronous>, transform_indices = @transform_1, window_bounds = array<i64: 32, 512>}, {pipeline_mode = #tpu.pipeline_mode<synchronous>, transform_indices = @transform_2, window_bounds = array<i64: 128, 512>}, {pipeline_mode = #tpu.pipeline_mode<synchronous>, transform_indices = @transform_3, window_bounds = array<i64: 1, 512>}, {pipeline_mode = #tpu.pipeline_mode<synchronous>, transform_indices = @transform_4, window_bounds = array<i64: 8, 128>}]} {
    %c0_i32 = arith.constant 0 : i32
    %0 = arith.cmpi eq, %arg0, %c0_i32 : i32
    %1 = arith.extui %0 : i1 to i32
    %c0_i32_0 = arith.constant 0 : i32
    %2 = arith.cmpi ne, %1, %c0_i32_0 : i32
    scf.if %2 {
      %cst_50 = arith.constant 0.000000e+00 : f32
      %149 = vector.broadcast %cst_50 : f32 to vector<8x128xf32>
      %c0_51 = arith.constant 0 : index
      %c0_52 = arith.constant 0 : index
      %150 = vector.load %arg7[%c0_51, %c0_52] : memref<8x128xf32, #tpu.memory_space<vmem>>, vector<8x128xf32>
      tpu.vector_store %arg7[%c0_51, %c0_52], %149 {strides = array<i32>} : memref<8x128xf32, #tpu.memory_space<vmem>>, vector<8x128xf32>,
      %cst_53 = arith.constant 0.000000e+00 : f32
      %151 = vector.broadcast %cst_53 : f32 to vector<8x128xf32>
      %c0_54 = arith.constant 0 : index
      %c0_55 = arith.constant 0 : index
      %152 = vector.load %arg8[%c0_54, %c0_55] : memref<8x128xf32, #tpu.memory_space<vmem>>, vector<8x128xf32>
      tpu.vector_store %arg8[%c0_54, %c0_55], %151 {strides = array<i32>} : memref<8x128xf32, #tpu.memory_space<vmem>>, vector<8x128xf32>,
    } else {
    }
    %c0 = arith.constant 0 : index
    %c0_1 = arith.constant 0 : index
    %3 = vector.load %arg1[%c0, %c0_1] : memref<32x32xbf16, #tpu.memory_space<vmem>>, vector<32x32xbf16>
    %c0_2 = arith.constant 0 : index
    %c0_3 = arith.constant 0 : index
    %4 = vector.load %arg2[%c0_2, %c0_3] : memref<32x512xbf16, #tpu.memory_space<vmem>>, vector<32x512xbf16>
    %cst = arith.constant dense<0.000000e+00> : vector<32x512xf32>
    %5 = tpu.matmul %3, %4, %cst {dimension_numbers = #tpu.dot_dimension_numbers<[1], [0], [0], [1], [0, 0, 1, 1], [], []>} : vector<32x32xbf16>, vector<32x512xbf16>, vector<32x512xf32> -> vector<32x512xf32>
    %c0_4 = arith.constant 0 : index
    %c0_5 = arith.constant 0 : index
    %6 = vector.load %arg4[%c0_4, %c0_5] : memref<1x512xf32, #tpu.memory_space<vmem>>, vector<1x512xf32>
    %7 = vector.broadcast %6 : vector<1x512xf32> to vector<32x512xf32>
    %8 = arith.addf %5, %7 : vector<32x512xf32>
    %c0_6 = arith.constant 0 : index
    %c0_7 = arith.constant 0 : index
    %9 = vector.load %arg6[%c0_6, %c0_7] : memref<32x512xf32, #tpu.memory_space<vmem>>, vector<32x512xf32>
    tpu.vector_store %arg6[%c0_6, %c0_7], %8 {strides = array<i32>} : memref<32x512xf32, #tpu.memory_space<vmem>>, vector<32x512xf32>,
    %c0_8 = arith.constant 0 : index
    %c0_9 = arith.constant 0 : index
    %10 = vector.load %arg7[%c0_8, %c0_9] : memref<8x128xf32, #tpu.memory_space<vmem>>, vector<8x128xf32>
    %c0_10 = arith.constant 0 : index
    %c0_11 = arith.constant 0 : index
    %11 = vector.load %arg8[%c0_10, %c0_11] : memref<8x128xf32, #tpu.memory_space<vmem>>, vector<8x128xf32>
    %c0_i32_12 = arith.constant 0 : i32
    %c8_i32 = arith.constant 8 : i32
    %12 = arith.muli %c0_i32_12, %c8_i32 : i32
    %13 = tpu.assume_multiple %12, 8 : i32
    %14 = arith.index_cast %13 : i32 to index
    %c0_13 = arith.constant 0 : index
    %15 = vector.load %arg6[%14, %c0_13] : memref<32x512xf32, #tpu.memory_space<vmem>>, vector<8x512xf32>
    %16 = arith.truncf %10 : vector<8x128xf32> to vector<8x128xbf16>
    %c0_14 = arith.constant 0 : index
    %c0_15 = arith.constant 0 : index
    %17 = vector.load %arg3[%c0_14, %c0_15] : memref<128x512xbf16, #tpu.memory_space<vmem>>, vector<128x512xbf16>
    %cst_16 = arith.constant dense<0.000000e+00> : vector<8x512xf32>
    %18 = tpu.matmul %16, %17, %cst_16 {dimension_numbers = #tpu.dot_dimension_numbers<[1], [0], [0], [1], [0, 0, 1, 1], [], []>} : vector<8x128xbf16>, vector<128x512xbf16>, vector<8x512xf32> -> vector<8x512xf32>
    %19 = arith.addf %15, %18 : vector<8x512xf32>
    %20 = vector.extract_strided_slice %19 {offsets = [0, 0], sizes = [8, 128], strides = [1, 1]} : vector<8x512xf32> to vector<8x128xf32>
    %21 = arith.negf %20 : vector<8x128xf32>
    %22 = math.exp %21 : vector<8x128xf32>
    %cst_17 = arith.constant 1.000000e+00 : f32
    %23 = vector.broadcast %cst_17 : f32 to vector<8x128xf32>
    %24 = arith.addf %23, %22 : vector<8x128xf32>
    %25 = arith.divf %23, %24 : vector<8x128xf32>
    %26 = vector.extract_strided_slice %19 {offsets = [0, 128], sizes = [8, 128], strides = [1, 1]} : vector<8x512xf32> to vector<8x128xf32>
    %27 = arith.negf %26 : vector<8x128xf32>
    %28 = math.exp %27 : vector<8x128xf32>
    %cst_18 = arith.constant 1.000000e+00 : f32
    %29 = vector.broadcast %cst_18 : f32 to vector<8x128xf32>
    %30 = arith.addf %29, %28 : vector<8x128xf32>
    %31 = arith.divf %29, %30 : vector<8x128xf32>
    %32 = vector.extract_strided_slice %19 {offsets = [0, 256], sizes = [8, 128], strides = [1, 1]} : vector<8x512xf32> to vector<8x128xf32>
    %33 = math.tanh %32 : vector<8x128xf32>
    %34 = vector.extract_strided_slice %19 {offsets = [0, 384], sizes = [8, 128], strides = [1, 1]} : vector<8x512xf32> to vector<8x128xf32>
    %35 = arith.negf %34 : vector<8x128xf32>
    %36 = math.exp %35 : vector<8x128xf32>
    %cst_19 = arith.constant 1.000000e+00 : f32
    %37 = vector.broadcast %cst_19 : f32 to vector<8x128xf32>
    %38 = arith.addf %37, %36 : vector<8x128xf32>
    %39 = arith.divf %37, %38 : vector<8x128xf32>
    %40 = arith.mulf %31, %11 : vector<8x128xf32>
    %41 = arith.mulf %25, %33 : vector<8x128xf32>
    %42 = arith.addf %40, %41 : vector<8x128xf32>
    %43 = math.tanh %42 : vector<8x128xf32>
    %44 = arith.mulf %39, %43 : vector<8x128xf32>
    %c1_i32 = arith.constant 1 : i32
    %c8_i32_20 = arith.constant 8 : i32
    %45 = arith.muli %c1_i32, %c8_i32_20 : i32
    %46 = tpu.assume_multiple %45, 8 : i32
    %47 = arith.index_cast %46 : i32 to index
    %c0_21 = arith.constant 0 : index
    %48 = vector.load %arg6[%47, %c0_21] : memref<32x512xf32, #tpu.memory_space<vmem>>, vector<8x512xf32>
    %49 = arith.truncf %44 : vector<8x128xf32> to vector<8x128xbf16>
    %c0_22 = arith.constant 0 : index
    %c0_23 = arith.constant 0 : index
    %50 = vector.load %arg3[%c0_22, %c0_23] : memref<128x512xbf16, #tpu.memory_space<vmem>>, vector<128x512xbf16>
    %cst_24 = arith.constant dense<0.000000e+00> : vector<8x512xf32>
    %51 = tpu.matmul %49, %50, %cst_24 {dimension_numbers = #tpu.dot_dimension_numbers<[1], [0], [0], [1], [0, 0, 1, 1], [], []>} : vector<8x128xbf16>, vector<128x512xbf16>, vector<8x512xf32> -> vector<8x512xf32>
    %52 = arith.addf %48, %51 : vector<8x512xf32>
    %53 = vector.extract_strided_slice %52 {offsets = [0, 0], sizes = [8, 128], strides = [1, 1]} : vector<8x512xf32> to vector<8x128xf32>
    %54 = arith.negf %53 : vector<8x128xf32>
    %55 = math.exp %54 : vector<8x128xf32>
    %cst_25 = arith.constant 1.000000e+00 : f32
    %56 = vector.broadcast %cst_25 : f32 to vector<8x128xf32>
    %57 = arith.addf %56, %55 : vector<8x128xf32>
    %58 = arith.divf %56, %57 : vector<8x128xf32>
    %59 = vector.extract_strided_slice %52 {offsets = [0, 128], sizes = [8, 128], strides = [1, 1]} : vector<8x512xf32> to vector<8x128xf32>
    %60 = arith.negf %59 : vector<8x128xf32>
    %61 = math.exp %60 : vector<8x128xf32>
    %cst_26 = arith.constant 1.000000e+00 : f32
    %62 = vector.broadcast %cst_26 : f32 to vector<8x128xf32>
    %63 = arith.addf %62, %61 : vector<8x128xf32>
    %64 = arith.divf %62, %63 : vector<8x128xf32>
    %65 = vector.extract_strided_slice %52 {offsets = [0, 256], sizes = [8, 128], strides = [1, 1]} : vector<8x512xf32> to vector<8x128xf32>
    %66 = math.tanh %65 : vector<8x128xf32>
    %67 = vector.extract_strided_slice %52 {offsets = [0, 384], sizes = [8, 128], strides = [1, 1]} : vector<8x512xf32> to vector<8x128xf32>
    %68 = arith.negf %67 : vector<8x128xf32>
    %69 = math.exp %68 : vector<8x128xf32>
    %cst_27 = arith.constant 1.000000e+00 : f32
    %70 = vector.broadcast %cst_27 : f32 to vector<8x128xf32>
    %71 = arith.addf %70, %69 : vector<8x128xf32>
    %72 = arith.divf %70, %71 : vector<8x128xf32>
    %73 = arith.mulf %64, %42 : vector<8x128xf32>
    %74 = arith.mulf %58, %66 : vector<8x128xf32>
    %75 = arith.addf %73, %74 : vector<8x128xf32>
    %76 = math.tanh %75 : vector<8x128xf32>
    %77 = arith.mulf %72, %76 : vector<8x128xf32>
    %c2_i32 = arith.constant 2 : i32
    %c8_i32_28 = arith.constant 8 : i32
    %78 = arith.muli %c2_i32, %c8_i32_28 : i32
    %79 = tpu.assume_multiple %78, 8 : i32
    %80 = arith.index_cast %79 : i32 to index
    %c0_29 = arith.constant 0 : index
    %81 = vector.load %arg6[%80, %c0_29] : memref<32x512xf32, #tpu.memory_space<vmem>>, vector<8x512xf32>
    %82 = arith.truncf %77 : vector<8x128xf32> to vector<8x128xbf16>
    %c0_30 = arith.constant 0 : index
    %c0_31 = arith.constant 0 : index
    %83 = vector.load %arg3[%c0_30, %c0_31] : memref<128x512xbf16, #tpu.memory_space<vmem>>, vector<128x512xbf16>
    %cst_32 = arith.constant dense<0.000000e+00> : vector<8x512xf32>
    %84 = tpu.matmul %82, %83, %cst_32 {dimension_numbers = #tpu.dot_dimension_numbers<[1], [0], [0], [1], [0, 0, 1, 1], [], []>} : vector<8x128xbf16>, vector<128x512xbf16>, vector<8x512xf32> -> vector<8x512xf32>
    %85 = arith.addf %81, %84 : vector<8x512xf32>
    %86 = vector.extract_strided_slice %85 {offsets = [0, 0], sizes = [8, 128], strides = [1, 1]} : vector<8x512xf32> to vector<8x128xf32>
    %87 = arith.negf %86 : vector<8x128xf32>
    %88 = math.exp %87 : vector<8x128xf32>
    %cst_33 = arith.constant 1.000000e+00 : f32
    %89 = vector.broadcast %cst_33 : f32 to vector<8x128xf32>
    %90 = arith.addf %89, %88 : vector<8x128xf32>
    %91 = arith.divf %89, %90 : vector<8x128xf32>
    %92 = vector.extract_strided_slice %85 {offsets = [0, 128], sizes = [8, 128], strides = [1, 1]} : vector<8x512xf32> to vector<8x128xf32>
    %93 = arith.negf %92 : vector<8x128xf32>
    %94 = math.exp %93 : vector<8x128xf32>
    %cst_34 = arith.constant 1.000000e+00 : f32
    %95 = vector.broadcast %cst_34 : f32 to vector<8x128xf32>
    %96 = arith.addf %95, %94 : vector<8x128xf32>
    %97 = arith.divf %95, %96 : vector<8x128xf32>
    %98 = vector.extract_strided_slice %85 {offsets = [0, 256], sizes = [8, 128], strides = [1, 1]} : vector<8x512xf32> to vector<8x128xf32>
    %99 = math.tanh %98 : vector<8x128xf32>
    %100 = vector.extract_strided_slice %85 {offsets = [0, 384], sizes = [8, 128], strides = [1, 1]} : vector<8x512xf32> to vector<8x128xf32>
    %101 = arith.negf %100 : vector<8x128xf32>
    %102 = math.exp %101 : vector<8x128xf32>
    %cst_35 = arith.constant 1.000000e+00 : f32
    %103 = vector.broadcast %cst_35 : f32 to vector<8x128xf32>
    %104 = arith.addf %103, %102 : vector<8x128xf32>
    %105 = arith.divf %103, %104 : vector<8x128xf32>
    %106 = arith.mulf %97, %75 : vector<8x128xf32>
    %107 = arith.mulf %91, %99 : vector<8x128xf32>
    %108 = arith.addf %106, %107 : vector<8x128xf32>
    %109 = math.tanh %108 : vector<8x128xf32>
    %110 = arith.mulf %105, %109 : vector<8x128xf32>
    %c3_i32 = arith.constant 3 : i32
    %c8_i32_36 = arith.constant 8 : i32
    %111 = arith.muli %c3_i32, %c8_i32_36 : i32
    %112 = tpu.assume_multiple %111, 8 : i32
    %113 = arith.index_cast %112 : i32 to index
    %c0_37 = arith.constant 0 : index
    %114 = vector.load %arg6[%113, %c0_37] : memref<32x512xf32, #tpu.memory_space<vmem>>, vector<8x512xf32>
    %115 = arith.truncf %110 : vector<8x128xf32> to vector<8x128xbf16>
    %c0_38 = arith.constant 0 : index
    %c0_39 = arith.constant 0 : index
    %116 = vector.load %arg3[%c0_38, %c0_39] : memref<128x512xbf16, #tpu.memory_space<vmem>>, vector<128x512xbf16>
    %cst_40 = arith.constant dense<0.000000e+00> : vector<8x512xf32>
    %117 = tpu.matmul %115, %116, %cst_40 {dimension_numbers = #tpu.dot_dimension_numbers<[1], [0], [0], [1], [0, 0, 1, 1], [], []>} : vector<8x128xbf16>, vector<128x512xbf16>, vector<8x512xf32> -> vector<8x512xf32>
    %118 = arith.addf %114, %117 : vector<8x512xf32>
    %119 = vector.extract_strided_slice %118 {offsets = [0, 0], sizes = [8, 128], strides = [1, 1]} : vector<8x512xf32> to vector<8x128xf32>
    %120 = arith.negf %119 : vector<8x128xf32>
    %121 = math.exp %120 : vector<8x128xf32>
    %cst_41 = arith.constant 1.000000e+00 : f32
    %122 = vector.broadcast %cst_41 : f32 to vector<8x128xf32>
    %123 = arith.addf %122, %121 : vector<8x128xf32>
    %124 = arith.divf %122, %123 : vector<8x128xf32>
    %125 = vector.extract_strided_slice %118 {offsets = [0, 128], sizes = [8, 128], strides = [1, 1]} : vector<8x512xf32> to vector<8x128xf32>
    %126 = arith.negf %125 : vector<8x128xf32>
    %127 = math.exp %126 : vector<8x128xf32>
    %cst_42 = arith.constant 1.000000e+00 : f32
    %128 = vector.broadcast %cst_42 : f32 to vector<8x128xf32>
    %129 = arith.addf %128, %127 : vector<8x128xf32>
    %130 = arith.divf %128, %129 : vector<8x128xf32>
    %131 = vector.extract_strided_slice %118 {offsets = [0, 256], sizes = [8, 128], strides = [1, 1]} : vector<8x512xf32> to vector<8x128xf32>
    %132 = math.tanh %131 : vector<8x128xf32>
    %133 = vector.extract_strided_slice %118 {offsets = [0, 384], sizes = [8, 128], strides = [1, 1]} : vector<8x512xf32> to vector<8x128xf32>
    %134 = arith.negf %133 : vector<8x128xf32>
    %135 = math.exp %134 : vector<8x128xf32>
    %cst_43 = arith.constant 1.000000e+00 : f32
    %136 = vector.broadcast %cst_43 : f32 to vector<8x128xf32>
    %137 = arith.addf %136, %135 : vector<8x128xf32>
    %138 = arith.divf %136, %137 : vector<8x128xf32>
    %139 = arith.mulf %130, %108 : vector<8x128xf32>
    %140 = arith.mulf %124, %132 : vector<8x128xf32>
    %141 = arith.addf %139, %140 : vector<8x128xf32>
    %142 = math.tanh %141 : vector<8x128xf32>
    %143 = arith.mulf %138, %142 : vector<8x128xf32>
    %c4_i32 = arith.constant 4 : i32
    %c0_44 = arith.constant 0 : index
    %c0_45 = arith.constant 0 : index
    %144 = vector.load %arg7[%c0_44, %c0_45] : memref<8x128xf32, #tpu.memory_space<vmem>>, vector<8x128xf32>
    tpu.vector_store %arg7[%c0_44, %c0_45], %143 {strides = array<i32>} : memref<8x128xf32, #tpu.memory_space<vmem>>, vector<8x128xf32>,
    %c0_46 = arith.constant 0 : index
    %c0_47 = arith.constant 0 : index
    %145 = vector.load %arg8[%c0_46, %c0_47] : memref<8x128xf32, #tpu.memory_space<vmem>>, vector<8x128xf32>
    tpu.vector_store %arg8[%c0_46, %c0_47], %141 {strides = array<i32>} : memref<8x128xf32, #tpu.memory_space<vmem>>, vector<8x128xf32>,
    %c3_i32_48 = arith.constant 3 : i32
    %146 = arith.cmpi eq, %arg0, %c3_i32_48 : i32
    %147 = arith.extui %146 : i1 to i32
    %c0_i32_49 = arith.constant 0 : i32
    %148 = arith.cmpi ne, %147, %c0_i32_49 : i32
    scf.if %148 {
      %c0_50 = arith.constant 0 : index
      %c0_51 = arith.constant 0 : index
      %149 = vector.load %arg7[%c0_50, %c0_51] : memref<8x128xf32, #tpu.memory_space<vmem>>, vector<8x128xf32>
      %c0_52 = arith.constant 0 : index
      %c0_53 = arith.constant 0 : index
      %150 = vector.load %arg5[%c0_52, %c0_53] : memref<8x128xf32, #tpu.memory_space<vmem>>, vector<8x128xf32>
      tpu.vector_store %arg5[%c0_52, %c0_53], %149 {strides = array<i32>} : memref<8x128xf32, #tpu.memory_space<vmem>>, vector<8x128xf32>,
    } else {
    }
    return
  }
  func.func @transform_0(%arg0: i32) -> (i32, i32) {
    %c0_i32 = arith.constant 0 : i32
    %c0_i32_0 = arith.constant 0 : i32
    return %arg0, %c0_i32 : i32, i32
  }
  func.func @transform_1(%arg0: i32) -> (i32, i32) {
    %c0_i32 = arith.constant 0 : i32
    %c0_i32_0 = arith.constant 0 : i32
    %c0_i32_1 = arith.constant 0 : i32
    return %c0_i32, %c0_i32_0 : i32, i32
  }
  func.func @transform_2(%arg0: i32) -> (i32, i32) {
    %c0_i32 = arith.constant 0 : i32
    %c0_i32_0 = arith.constant 0 : i32
    %c0_i32_1 = arith.constant 0 : i32
    return %c0_i32, %c0_i32_0 : i32, i32
  }
  func.func @transform_3(%arg0: i32) -> (i32, i32) {
    %c0_i32 = arith.constant 0 : i32
    %c0_i32_0 = arith.constant 0 : i32
    %c0_i32_1 = arith.constant 0 : i32
    return %c0_i32, %c0_i32_0 : i32, i32
  }
  func.func @transform_4(%arg0: i32) -> (i32, i32) {
    %c0_i32 = arith.constant 0 : i32
    %c0_i32_0 = arith.constant 0 : i32
    %c0_i32_1 = arith.constant 0 : i32
    return %c0_i32, %c0_i32_0 : i32, i32
  }
}

</mosaic_0001>

<bundles_post_ra>
// kernel: tpu_custom_call.1
= control target key start
LH: loop header
LB: loop body
LE: loop exit
PB: predicated region body
PF: predicated region fallthrough
CT: control target
= control target key end

     0   :  { %9 = vsyncpa [#allocation6], 0  ;;  %s1847_s0 = inlined_call_operand.vmem [shape: bf16[128,32], index: 0, kind: input, shape index: {}]   ;;  %s1848_s1 = inlined_call_operand.vmem [shape: bf16[32,512], index: 1, kind: input, shape index: {}]   ;;  %s1849_s2 = inlined_call_operand.hbm [shape: bf16[128,512], index: 2, kind: input, shape index: {}]   ;;  %s1850_s3 = inlined_call_operand.vmem [shape: f32[1,512], index: 3, kind: input, shape index: {}]   ;;  %s1851_s4 = inlined_call_operand.hbm [shape: f32[8,128], index: 4, kind: output, shape index: {}]  }
   0x1   :  { %10 = vsyncpa [#allocation7], 0  ;;  %s1485_s15 = smov 0  }
   0x2 LB: > { %s1491_s16 = sadd.s32 4294967295, %s1452_s15   ;;  %p1157_p0 = scmp.ge.s32.totalorder %s1452_s15, 1  ;;  %s1452_s15 = sphi %s1485_s15, %s16_s15  }
   0x3   : > { %p131_p1 = scmp.lt.s32.totalorder %s1452_s15, 5  ;;  %s1454_s17 = smov [#allocation5]  }
   0x4   : > { %s146_s18 = sshll.u32 %s1454_s17, 4  ;;  %p1852_p4 = scmp.eq.s32.totalorder %s1491_s16, 0  ;;  %s147_s18 = int_to_ptr.vmem [resolvable:$true] %s146_s18 }
   0x5   : > { %p1496_p3 = pnand %p1157_p0, %p131_p1  ;;  %s1384_s23 = scalar_lea.hbm %s1849_s2, 4096 }
   0x6   : > { %p1385_p7 = scmp.ne.s32.totalorder %s1849_s2, %s1384_s23  ;;  %p1391_p11 = scmp.lt.u32.totalorder %s1384_s23, %s1849_s2 }
   0x7   : > { %s1856_s19 = scalar_select %p1496_p3, 1, 0 }
   0x8   : > { %p1236_p5 = pneg %p1496_p3 }
   0xa   : > { %p1505_p6 = pnand %p1852_p4, %p1236_p5 }
   0xc   : > { %p1386_p8 = pneg %p1505_p6 }
   0xe   : > { %p1387_p9 = pnand %p1386_p8, %p1385_p7 }
  0x10   : > { %p1388_p10 = pneg %p1387_p9 }
  0x12   : > { %p1393_p12 = pnand %p1391_p11, %p1388_p10 }
  0x14   : > { %1396 = shalt.err (!%p1393_p12)
}
  0x15   : > { %s1397_s28 = scalar_lea.vmem %s147_s18, 4096  ;;  %p1405_p5 = scmp.lt.s32.totalorder %s147_s18, %s147_s18 }
  0x16   : > { %p1398_p13 = scmp.ne.s32.totalorder %s147_s18, %s1397_s28  ;;  %p1406_p2 = scmp.lt.s32.totalorder %s1397_s28, %s1397_s28 }
  0x18   : > { %p1400_p0 = pnand %p1398_p13, %p1386_p8  ;;  %p1407_p4 = por %p1406_p2, %p1405_p5 }
  0x1a   : > { %p1401_p1 = pneg %p1400_p0 }
  0x1c   : > { %p1408_p3 = pnand %p1407_p4, %p1401_p1 }
  0x1e   : > { %1411 = shalt.err (!%p1408_p3)
}
  0x1f   : > { %s1455_s29 = smov 256   ;;  %s1456_s30 = smov 16  }
  0x20   : > { %1239 = dma.hbm_to_vmem [thread:$0]  (!%p1505_p6), %s1849_s2, 4096, %s147_s18, [#allocation6], %s1455_s29, %s1455_s29, %s1456_s30  }
  0x21   : > { %p1858_p7 = scmp.ne.s32.totalorder %s1856_s19, 0 }
  0x23   : > { %174 = sbr.rel (%p1858_p7) target bundleno = 1168 (0x490), region = 36 }
  0x2a   : > { %p1859_p9 = scmp.eq.s32.totalorder %s1491_s16, 0 }
  0x2c   : > { %1443 = dma.done.wait (%p1859_p9), [#allocation6], 4096   ;;  %p1860_p8 = pmov %p1859_p9 }
  0x2d   : > { %s1162_s7 = sshll.u32 %s1491_s16, 2  ;;  %p1861_p3 = scmp.ne.s32.totalorder %s1491_s16, 0 }
  0x2e   : > { %1445 = vsyncadd (%p1860_p8), [#allocation6], 4294963200  ;;  %p196_p2 = scmp.lt.s32.totalorder %s1162_s7, 15  ;;  %v1457_v0 = vmov (!%p1861_p3), 0.0  }
  0x2f   : > { %205 = sbr.rel (%p1861_p3) target bundleno = 54 (0x36), region = 44  ;;  %206 = vst [vmem:[#allocation3] sm:$0xff] (!%p1861_p3), %v1457_v0  ;;  %207 = vst [vmem:[#allocation4] sm:$0xff] (!%p1861_p3), %v1457_v0 }
  0x30   : > { %s1878_s7 = smov (!%p196_p2, %s1162_s7), 15 }
  0x31   : > { %s1163_s8 = sshll.u32 %s1878_s7, 2 }
  0x32   : > { %s1535_s11 = scalar_lea.vmem %s1847_s0, %s1163_s8 }
  0x36 PF: > { %v1258_v1 = vld [vmem:[%s1848_s1 + $0x4] ss:$16 sps:$4 sm:$0xff]   ;;  %v1260_v2 = vld [vmem:[%s1848_s1 + $0xc] ss:$16 sps:$4 sm:$0xff]   ;;  %v1854_v3 = vmov 0   ;;  %vm292_vm0 = vcmask 261120   ;;  %v222_v46 = vlaneseq }
  0x37   : > { %331 = vmatprep.mubr.bf16.mxu0 %v1854_v3  ;;  %384 = vmatprep.mubr.bf16.mxu1 %v1854_v3  ;;  %v1262_v4 = vld [vmem:[%s1848_s1] ss:$16 sps:$4 sm:$0xff]   ;;  %v1263_v5 = vld [vmem:[%s1848_s1 + $0x8] ss:$16 sps:$4 sm:$0xff]   ;;  %v1264_v6 = vld [vmem:[%s1848_s1 + $0x24] ss:$16 sps:$4 sm:$0xff]  }
  0x38   : > { %299 = vmatprep.subr.bf16.mxu0 %v1258_v1  ;;  %352 = vmatprep.subr.bf16.mxu1 %v1260_v2  ;;  %v1266_v7 = vld [vmem:[%s1848_s1 + $0x2c] ss:$16 sps:$4 sm:$0xff]   ;;  %v1268_v8 = vld [vmem:[%s1848_s1 + $0x20] ss:$16 sps:$4 sm:$0xff]   ;;  %v1269_v9 = vld [vmem:[%s1848_s1 + $0x28] ss:$16 sps:$4 sm:$0xff]  }
  0x39   : > { %300 = vmatpush1.bf16.msra.mxu0 %v1262_v4  ;;  %353 = vmatpush1.bf16.msra.mxu1 %v1263_v5  ;;  %v1270_v10 = vld [vmem:[%s1535_s11] sm:$0xff]   ;;  %v1568_v12 = vld [vmem:[#allocation5 + $0xc] ss:$16 sps:$4 sm:$0xff]   ;;  %v1572_v14 = vld [vmem:[#allocation5 + $0x8] ss:$16 sps:$4 sm:$0xff]   ;;  %v223_v47 = vshrl.u32 %v222_v46, 7 }
  0x3a   : > { %301 = vmatprep.subr.bf16.mxu0 %v1264_v6  ;;  %354 = vmatprep.subr.bf16.mxu1 %v1266_v7  ;;  %v1566_v11 = vld [vmem:[#allocation5 + $0x4] ss:$16 sps:$4 sm:$0xff]   ;;  %v1570_v13 = vld [vmem:[#allocation5] ss:$16 sps:$4 sm:$0xff]   ;;  %v1578_v16 = vld [vmem:[#allocation5 + $0x2c] ss:$16 sps:$4 sm:$0xff]  }
  0x3b   : > { %v1575_v15 = vld [vmem:[#allocation5 + $0x24] ss:$16 sps:$4 sm:$0xff]   ;;  %v1582_v17 = vld [vmem:[#allocation5 + $0x20] ss:$16 sps:$4 sm:$0xff]   ;;  %v1586_v18 = vld [vmem:[#allocation5 + $0x28] ss:$16 sps:$4 sm:$0xff]  }
  0x3c   : > { %v1590_v19 = vld [vmem:[#allocation5 + $0x44] ss:$16 sps:$4 sm:$0xff]   ;;  %v1592_v20 = vld [vmem:[#allocation5 + $0x4c] ss:$16 sps:$4 sm:$0xff]   ;;  %v1598_v21 = vld [vmem:[#allocation5 + $0x40] ss:$16 sps:$4 sm:$0xff]  }
  0x3d   : > { %302 = vmatpush1.bf16.msra.mxu0 %v1268_v8  ;;  %355 = vmatpush1.bf16.msra.mxu1 %v1269_v9  ;;  %v1600_v22 = vld [vmem:[#allocation5 + $0x48] ss:$16 sps:$4 sm:$0xff]   ;;  %v1602_v23 = vld [vmem:[#allocation5 + $0x64] ss:$16 sps:$4 sm:$0xff]   ;;  %v1606_v24 = vld [vmem:[#allocation5 + $0x6c] ss:$16 sps:$4 sm:$0xff]  }
  0x3e   : > { %623 = vmatprep.subr.bf16.mxu0 %v1566_v11  ;;  %664 = vmatprep.subr.bf16.mxu1 %v1568_v12  ;;  %v1608_v25 = vld [vmem:[#allocation5 + $0x60] ss:$16 sps:$4 sm:$0xff]   ;;  %v1610_v26 = vld [vmem:[#allocation5 + $0x68] ss:$16 sps:$4 sm:$0xff]   ;;  %v1614_v27 = vld [vmem:[#allocation5 + $0x84] ss:$16 sps:$4 sm:$0xff]  }
  0x3f   : > { %v1618_v28 = vld [vmem:[#allocation5 + $0x8c] ss:$16 sps:$4 sm:$0xff]   ;;  %v1621_v30 = vld [vmem:[#allocation5 + $0x80] ss:$16 sps:$4 sm:$0xff]   ;;  %v1625_v31 = vld [vmem:[#allocation5 + $0x88] ss:$16 sps:$4 sm:$0xff]  }
  0x40   : > { %1175 = vmatmul.mubr.msk.bf16.vlgmr.msra.gmra.mrb[0].mxu0 %vm292_vm0, %v1270_v10  ;;  %1177 = vmatmul.mubr.msk.bf16.vlgmr.msra.gmra.mrb[0].mxu1 %vm292_vm0, %v1270_v10  ;;  %v1305_v29 = vld [vmem:[%s1535_s11 + $0x8] sm:$0xff]   ;;  %v1629_v32 = vld [vmem:[#allocation5 + $0xa4] ss:$16 sps:$4 sm:$0xff]   ;;  %v1639_v34 = vld [vmem:[#allocation5 + $0xa0] ss:$16 sps:$4 sm:$0xff]   ;;  %v224_v48 = vsub.s32 0, %v223_v47 }
  0x41   : > { %624 = vmatpush1.bf16.msra.mxu0 %v1570_v13  ;;  %665 = vmatpush1.bf16.msra.mxu1 %v1572_v14  ;;  %v1631_v33 = vld [vmem:[#allocation5 + $0xac] ss:$16 sps:$4 sm:$0xff]   ;;  %v1641_v35 = vld [vmem:[#allocation5 + $0xa8] ss:$16 sps:$4 sm:$0xff]   ;;  %v1645_v36 = vld [vmem:[#allocation5 + $0xc4] ss:$16 sps:$4 sm:$0xff]  }
  0x42   : > { %625 = vmatprep.subr.bf16.mxu0 %v1575_v15  ;;  %666 = vmatprep.subr.bf16.mxu1 %v1578_v16  ;;  %v1647_v37 = vld [vmem:[#allocation5 + $0xcc] ss:$16 sps:$4 sm:$0xff]   ;;  %v1651_v38 = vld [vmem:[#allocation5 + $0xc0] ss:$16 sps:$4 sm:$0xff]   ;;  %v1653_v39 = vld [vmem:[#allocation5 + $0xc8] ss:$16 sps:$4 sm:$0xff]  }
  0x43   : > { %341 = vmatprep.mubr.bf16.mxu0 %v1854_v3  ;;  %394 = vmatprep.mubr.bf16.mxu1 %v1854_v3  ;;  %v1657_v40 = vld [vmem:[#allocation5 + $0xe4] ss:$16 sps:$4 sm:$0xff]   ;;  %v1659_v41 = vld [vmem:[#allocation5 + $0xec] ss:$16 sps:$4 sm:$0xff]   ;;  %v1663_v42 = vld [vmem:[#allocation5 + $0xe0] ss:$16 sps:$4 sm:$0xff]  }
  0x44   : > { %v1665_v43 = vld [vmem:[#allocation5 + $0xe8] ss:$16 sps:$4 sm:$0xff]   ;;  %v421_v44 = vld [vmem:[#allocation3] sm:$0xff]  ;;  %v232_v49 = vsub.s32 2, %v223_v47  ;;  %v236_v51 = vsub.s32 3, %v223_v47  ;;  %v228_v52 = vsub.s32 1, %v223_v47 }
  0x45   : > { %626 = vmatpush1.bf16.msra.mxu0 %v1582_v17  ;;  %667 = vmatpush1.bf16.msra.mxu1 %v1586_v18  ;;  %v430_v45 = vpack.c.bf16 %v421_v44, %v421_v44  ;;  %v220_v50 = vld [vmem:[%s1850_s3] sm:$0xf]  ;;  %p1223_p4 = scmp.ne.s32.totalorder %s1491_s16, 3 }
  0x46   : > { %627 = vmatprep.subr.bf16.mxu0 %v1590_v19  ;;  %668 = vmatprep.subr.bf16.mxu1 %v1592_v20  ;;  %v225_v53 = vrot.slane %v220_v50, %v224_v48  ;;  %v233_v54 = vrot.slane %v220_v50, %v232_v49  ;;  %v237_v57 = vrot.slane %v220_v50, %v236_v51 }
  0x47   : > { %v229_v60 = vrot.slane %v220_v50, %v228_v52 }
  0x48   : > { %1176 = vmatmul.mubr.msk.bf16.gmra.mrb[4].mxu0 %vm292_vm0, %v1305_v29  ;;  %1178 = vmatmul.mubr.msk.bf16.gmra.mrb[4].mxu1 %vm292_vm0, %v1305_v29 }
  0x49   : > { %628 = vmatpush1.bf16.msra.mxu0 %v1598_v21  ;;  %669 = vmatpush1.bf16.msra.mxu1 %v1600_v22 }
  0x4a   : > { %629 = vmatprep.subr.bf16.mxu0 %v1602_v23  ;;  %670 = vmatprep.subr.bf16.mxu1 %v1606_v24 }
  0x4b   : > { %655 = vmatprep.mubr.bf16.mxu0 %v1854_v3  ;;  %696 = vmatprep.mubr.bf16.mxu1 %v1854_v3 }
  0x4d   : > { %630 = vmatpush1.bf16.msra.mxu0 %v1608_v25  ;;  %671 = vmatpush1.bf16.msra.mxu1 %v1610_v26 }
  0x4e   : > { %631 = vmatprep.subr.bf16.mxu0 %v1614_v27  ;;  %672 = vmatprep.subr.bf16.mxu1 %v1618_v28 }
  0x51   : > { %632 = vmatpush1.bf16.msra.mxu0 %v1621_v30  ;;  %673 = vmatpush1.bf16.msra.mxu1 %v1625_v31 }
  0x52   : > { %633 = vmatprep.subr.bf16.mxu0 %v1629_v32  ;;  %674 = vmatprep.subr.bf16.mxu1 %v1631_v33 }
  0x55   : > { %634 = vmatpush1.bf16.msra.mxu0 %v1639_v34  ;;  %675 = vmatpush1.bf16.msra.mxu1 %v1641_v35 }
  0x56   : > { %635 = vmatprep.subr.bf16.mxu0 %v1645_v36  ;;  %676 = vmatprep.subr.bf16.mxu1 %v1647_v37 }
  0x59   : > { %636 = vmatpush1.bf16.msra.mxu0 %v1651_v38  ;;  %677 = vmatpush1.bf16.msra.mxu1 %v1653_v39 }
  0x5a   : > { %637 = vmatprep.subr.bf16.mxu0 %v1657_v40  ;;  %678 = vmatprep.subr.bf16.mxu1 %v1659_v41 }
  0x5d   : > { %638 = vmatpush1.bf16.msra.mxu0 %v1663_v42  ;;  %679 = vmatpush1.bf16.msra.mxu1 %v1665_v43 }
  0x5e   : > { %741 = vmatprep.subr.bf16.mxu0 %v1566_v11  ;;  %782 = vmatprep.subr.bf16.mxu1 %v1568_v12 }
  0x60   : > { %656 = vmatmul.mubr.bf16.vlgmr.msra.gmra.mrb[8].mxu0 %v430_v45  ;;  %697 = vmatmul.mubr.bf16.vlgmr.msra.gmra.mrb[8].mxu1 %v430_v45 }
  0x61   : > { %742 = vmatpush1.bf16.msra.mxu0 %v1570_v13  ;;  %783 = vmatpush1.bf16.msra.mxu1 %v1572_v14 }
  0x62   : > { %743 = vmatprep.subr.bf16.mxu0 %v1575_v15  ;;  %784 = vmatprep.subr.bf16.mxu1 %v1578_v16 }
  0x63   : > { %773 = vmatprep.mubr.bf16.mxu0 %v1854_v3  ;;  %814 = vmatprep.mubr.bf16.mxu1 %v1854_v3 }
  0x65   : > { %744 = vmatpush1.bf16.msra.mxu0 %v1582_v17  ;;  %785 = vmatpush1.bf16.msra.mxu1 %v1586_v18 }
  0x66   : > { %745 = vmatprep.subr.bf16.mxu0 %v1590_v19  ;;  %786 = vmatprep.subr.bf16.mxu1 %v1592_v20 }
  0x69   : > { %746 = vmatpush1.bf16.msra.mxu0 %v1598_v21  ;;  %787 = vmatpush1.bf16.msra.mxu1 %v1600_v22 }
  0x6a   : > { %747 = vmatprep.subr.bf16.mxu0 %v1602_v23  ;;  %788 = vmatprep.subr.bf16.mxu1 %v1606_v24 }
  0x6d   : > { %748 = vmatpush1.bf16.msra.mxu0 %v1608_v25  ;;  %789 = vmatpush1.bf16.msra.mxu1 %v1610_v26 }
  0x6e   : > { %749 = vmatprep.subr.bf16.mxu0 %v1614_v27  ;;  %790 = vmatprep.subr.bf16.mxu1 %v1618_v28 }
  0x71   : > { %750 = vmatpush1.bf16.msra.mxu0 %v1621_v30  ;;  %791 = vmatpush1.bf16.msra.mxu1 %v1625_v31 }
  0x72   : > { %751 = vmatprep.subr.bf16.mxu0 %v1629_v32  ;;  %792 = vmatprep.subr.bf16.mxu1 %v1631_v33 }
  0x75   : > { %752 = vmatpush1.bf16.msra.mxu0 %v1639_v34  ;;  %793 = vmatpush1.bf16.msra.mxu1 %v1641_v35 }
  0x76   : > { %753 = vmatprep.subr.bf16.mxu0 %v1645_v36  ;;  %794 = vmatprep.subr.bf16.mxu1 %v1647_v37 }
  0x79   : > { %754 = vmatpush1.bf16.msra.mxu0 %v1651_v38  ;;  %795 = vmatpush1.bf16.msra.mxu1 %v1653_v39 }
  0x7a   : > { %755 = vmatprep.subr.bf16.mxu0 %v1657_v40  ;;  %796 = vmatprep.subr.bf16.mxu1 %v1659_v41 }
  0x7d   : > { %756 = vmatpush1.bf16.msra.mxu0 %v1663_v42  ;;  %797 = vmatpush1.bf16.msra.mxu1 %v1665_v43 }
  0x7e   : > { %859 = vmatprep.subr.bf16.mxu0 %v1566_v11  ;;  %900 = vmatprep.subr.bf16.mxu1 %v1568_v12 }
 0x113   : > { %v333_v55 = vpop.f32.mrb[0].mxu0  ;;  %v386_v56 = vpop.f32.mrb[0].mxu1 }
 0x114   : > { %v335_v58 = vpop.f32.mrb[1].mxu0  ;;  %v388_v59 = vpop.f32.mrb[1].mxu1 }
 0x115   : > { %v337_v61 = vpop.f32.mrb[2].mxu0  ;;  %v390_v62 = vpop.f32.mrb[2].mxu1 }
 0x116   : > { %v1710_v63 = vadd.f32 %v337_v61, %v225_v53  ;;  %v339_v0 = vpop.f32.mrb[3].mxu0  ;;  %v1712_v1 = vadd.f32 %v390_v62, %v233_v54  ;;  %v392_v2 = vpop.f32.mrb[3].mxu1  ;;  %v334_v62 = vadd.f32 %v333_v55, %v225_v53 }
 0x117   : > { %v1714_v4 = vadd.f32 %v339_v0, %v229_v60  ;;  %v1716_v5 = vadd.f32 %v392_v2, %v237_v57  ;;  %v387_v0 = vadd.f32 %v386_v56, %v233_v54  ;;  %v336_v2 = vadd.f32 %v335_v58, %v229_v60 }
 0x11b   : > { %v343_v6 = vpop.f32.mrb[4].mxu0  ;;  %v396_v7 = vpop.f32.mrb[4].mxu1 }
 0x11c   : > { %v1718_v8 = vadd.f32 %v343_v6, %v225_v53  ;;  %v345_v9 = vpop.f32.mrb[5].mxu0  ;;  %v1720_v10 = vadd.f32 %v396_v7, %v233_v54  ;;  %v398_v29 = vpop.f32.mrb[5].mxu1  ;;  %v389_v6 = vadd.f32 %v388_v59, %v237_v57 }
 0x11d   : > { %v1722_v44 = vadd.f32 %v345_v9, %v229_v60  ;;  %v347_v45 = vpop.f32.mrb[6].mxu0  ;;  %v1724_v46 = vadd.f32 %v398_v29, %v237_v57  ;;  %v400_v47 = vpop.f32.mrb[6].mxu1 }
 0x11e   : > { %1862 = vst [vmem:[#allocation11_spill] sm:$0xff] %v1718_v8  ;;  %1863 = vst [vmem:[#allocation12_spill] sm:$0xff] %v1720_v10  ;;  %v1726_v48 = vadd.f32 %v347_v45, %v225_v53  ;;  %v349_v49 = vpop.f32.mrb[7].mxu0  ;;  %v1728_v50 = vadd.f32 %v400_v47, %v233_v54  ;;  %v402_v51 = vpop.f32.mrb[7].mxu1 }
 0x11f   : > { %1864 = vst [vmem:[#allocation13_spill] sm:$0xff] %v1722_v44  ;;  %1865 = vst [vmem:[#allocation14_spill] sm:$0xff] %v1724_v46  ;;  %v1730_v52 = vadd.f32 %v349_v49, %v229_v60  ;;  %v1732_v61 = vadd.f32 %v402_v51, %v237_v57  ;;  %v422_v60 = vld [vmem:[#allocation4] sm:$0xff] }
 0x120   : > { %1866 = vst [vmem:[#allocation15_spill] sm:$0xff] %v1726_v48  ;;  %1867 = vst [vmem:[#allocation16_spill] sm:$0xff] %v1728_v50 }
 0x121   : > { %1868 = vst [vmem:[#allocation17_spill] sm:$0xff] %v1730_v52 }
 0x133   : > { %v657_v7 = vpop.f32.mrb[8].mxu0  ;;  %v698_v9 = vpop.f32.mrb[8].mxu1 }
 0x134   : > { %v705_v3 = vadd.f32 %v657_v7, %v334_v62  ;;  %v707_v29 = vadd.f32 %v698_v9, %v387_v0  ;;  %v659_v46 = vpop.f32.mrb[9].mxu0  ;;  %v700_v44 = vpop.f32.mrb[9].mxu1  ;;  %v1869_v0 = vmov 0  }
 0x135   : > { %v706_v45 = vadd.f32 %v659_v46, %v336_v2  ;;  %v708_v48 = vadd.f32 %v700_v44, %v389_v6  ;;  %v661_v10 = vpop.f32.mrb[10].mxu0  ;;  %v702_v47 = vpop.f32.mrb[10].mxu1 }
 0x136   : > { %v1211_v50 = vmul.f32 -1.442695, %v705_v3  ;;  %v662_v8 = vpop.f32.mrb[11].mxu0  ;;  %v703_v49 = vpop.f32.mrb[11].mxu1 }
 0x137   : > { %v1212_v52 = vmul.f32 -1.442695, %v706_v45  ;;  %v1213_v53 = vmul.f32 -1.442695, %v708_v48 }
 0x138   : > { %1320 = vpow2.f32 %v1211_v50 }
 0x139   : > { %1322 = vpow2.f32 %v1212_v52 }
 0x13a   : > { %1324 = vpow2.f32 %v1213_v53 }
 0x13b   : > { %1326 = vtanh.f32 %v707_v29 }
 0x142   : > { %v1321_v54 = vpop.eup %1320 }
 0x143   : > { %v1323_v55 = vpop.eup %1322  ;;  %v712_v56 = vadd.f32 1.0, %v1321_v54 }
 0x144   : > { %v718_v57 = vadd.f32 1.0, %v1323_v55  ;;  %v1325_v58 = vpop.eup %1324 }
 0x145   : > { %1328 = vrcp.f32 %v712_v56  ;;  %v1327_v59 = vpop.eup %1326  ;;  %v725_v8 = vadd.f32 1.0, %v1325_v58 }
 0x146   : > { %1330 = vrcp.f32 %v718_v57 }
 0x147   : > { %1332 = vrcp.f32 %v725_v8 }
 0x14f   : > { %v1329_v10 = vpop.eup %1328 }
 0x150   : > { %v1331_v44 = vpop.eup %1330  ;;  %v729_v3 = vmul.f32 %v1329_v10, %v1327_v59 }
 0x151   : > { %v728_v46 = vmul.f32 %v1331_v44, %v422_v60  ;;  %v1333_v48 = vpop.eup %1332 }
 0x153   : > { %v1734_v51 = vadd.f32 %v729_v3, %v728_v46 }
 0x155   : > { %1334 = vtanh.f32 %v1734_v51 }
 0x15f   : > { %v1335_v50 = vpop.eup %1334 }
 0x160   : > { %v732_v52 = vmul.f32 %v1335_v50, %v1333_v48 }
 0x162   : > { %v740_v62 = vpack.c.bf16 %v732_v52, %v732_v52 }
 0x164   : > { %774 = vmatmul.mubr.bf16.vlgmr.msra.gmra.mrb[12].mxu0 %v740_v62  ;;  %815 = vmatmul.mubr.bf16.vlgmr.msra.gmra.mrb[12].mxu1 %v740_v62 }
 0x165   : > { %860 = vmatpush1.bf16.msra.mxu0 %v1570_v13  ;;  %901 = vmatpush1.bf16.msra.mxu1 %v1572_v14 }
 0x166   : > { %861 = vmatprep.subr.bf16.mxu0 %v1575_v15  ;;  %902 = vmatprep.subr.bf16.mxu1 %v1578_v16 }
 0x167   : > { %891 = vmatprep.mubr.bf16.mxu0 %v1869_v0  ;;  %932 = vmatprep.mubr.bf16.mxu1 %v1869_v0 }
 0x169   : > { %862 = vmatpush1.bf16.msra.mxu0 %v1582_v17  ;;  %903 = vmatpush1.bf16.msra.mxu1 %v1586_v18 }
 0x16a   : > { %863 = vmatprep.subr.bf16.mxu0 %v1590_v19  ;;  %904 = vmatprep.subr.bf16.mxu1 %v1592_v20 }
 0x16d   : > { %864 = vmatpush1.bf16.msra.mxu0 %v1598_v21  ;;  %905 = vmatpush1.bf16.msra.mxu1 %v1600_v22 }
 0x16e   : > { %865 = vmatprep.subr.bf16.mxu0 %v1602_v23  ;;  %906 = vmatprep.subr.bf16.mxu1 %v1606_v24 }
 0x171   : > { %866 = vmatpush1.bf16.msra.mxu0 %v1608_v25  ;;  %907 = vmatpush1.bf16.msra.mxu1 %v1610_v26 }
 0x172   : > { %867 = vmatprep.subr.bf16.mxu0 %v1614_v27  ;;  %908 = vmatprep.subr.bf16.mxu1 %v1618_v28 }
 0x175   : > { %868 = vmatpush1.bf16.msra.mxu0 %v1621_v30  ;;  %909 = vmatpush1.bf16.msra.mxu1 %v1625_v31 }
 0x176   : > { %869 = vmatprep.subr.bf16.mxu0 %v1629_v32  ;;  %910 = vmatprep.subr.bf16.mxu1 %v1631_v33 }
 0x179   : > { %870 = vmatpush1.bf16.msra.mxu0 %v1639_v34  ;;  %911 = vmatpush1.bf16.msra.mxu1 %v1641_v35 }
 0x17a   : > { %871 = vmatprep.subr.bf16.mxu0 %v1645_v36  ;;  %912 = vmatprep.subr.bf16.mxu1 %v1647_v37 }
 0x17d   : > { %872 = vmatpush1.bf16.msra.mxu0 %v1651_v38  ;;  %913 = vmatpush1.bf16.msra.mxu1 %v1653_v39 }
 0x17e   : > { %873 = vmatprep.subr.bf16.mxu0 %v1657_v40  ;;  %914 = vmatprep.subr.bf16.mxu1 %v1659_v41 }
 0x181   : > { %874 = vmatpush1.bf16.msra.mxu0 %v1663_v42  ;;  %915 = vmatpush1.bf16.msra.mxu1 %v1665_v43 }
 0x182   : > { %977 = vmatprep.subr.bf16.mxu0 %v1566_v11  ;;  %1018 = vmatprep.subr.bf16.mxu1 %v1568_v12 }
 0x237   : > { %v775_v2 = vpop.f32.mrb[12].mxu0  ;;  %v816_v6 = vpop.f32.mrb[12].mxu1 }
 0x238   : > { %v823_v7 = vadd.f32 %v775_v2, %v1710_v63  ;;  %v825_v9 = vadd.f32 %v816_v6, %v1712_v1  ;;  %v777_v29 = vpop.f32.mrb[13].mxu0  ;;  %v818_v45 = vpop.f32.mrb[13].mxu1 }
 0x239   : > { %v824_v47 = vadd.f32 %v777_v29, %v1714_v4  ;;  %v826_v49 = vadd.f32 %v818_v45, %v1716_v5  ;;  %v779_v53 = vpop.f32.mrb[14].mxu0  ;;  %v820_v54 = vpop.f32.mrb[14].mxu1  ;;  %v1874_v45 = vld [vmem:[#allocation15_spill] sm:$0xff] }
 0x23a   : > { %v1214_v55 = vmul.f32 -1.442695, %v823_v7  ;;  %v780_v56 = vpop.f32.mrb[15].mxu0  ;;  %v821_v57 = vpop.f32.mrb[15].mxu1 }
 0x23b   : > { %v1215_v11 = vmul.f32 -1.442695, %v824_v47  ;;  %v1216_v12 = vmul.f32 -1.442695, %v826_v49  ;;  %v1875_v49 = vld [vmem:[#allocation16_spill] sm:$0xff]  ;;  %v1876_v56 = vld [vmem:[#allocation17_spill] sm:$0xff] }
 0x23c   : > { %1336 = vpow2.f32 %v1214_v55 }
 0x23d   : > { %1338 = vpow2.f32 %v1215_v11 }
 0x23e   : > { %1340 = vpow2.f32 %v1216_v12 }
 0x23f   : > { %1342 = vtanh.f32 %v825_v9 }
 0x246   : > { %v1337_v58 = vpop.eup %1336 }
 0x247   : > { %v1339_v59 = vpop.eup %1338  ;;  %v830_v63 = vadd.f32 1.0, %v1337_v58 }
 0x248   : > { %v836_v1 = vadd.f32 1.0, %v1339_v59  ;;  %v1341_v4 = vpop.eup %1340 }
 0x249   : > { %1344 = vrcp.f32 %v830_v63  ;;  %v1343_v60 = vpop.eup %1342  ;;  %v843_v3 = vadd.f32 1.0, %v1341_v4 }
 0x24a   : > { %1346 = vrcp.f32 %v836_v1 }
 0x24b   : > { %1348 = vrcp.f32 %v843_v3 }
 0x253   : > { %v1345_v5 = vpop.eup %1344 }
 0x254   : > { %v1347_v10 = vpop.eup %1346  ;;  %v847_v44 = vmul.f32 %v1345_v5, %v1343_v60 }
 0x255   : > { %v846_v8 = vmul.f32 %v1347_v10, %v1734_v51  ;;  %v1349_v48 = vpop.eup %1348 }
 0x257   : > { %v1776_v46 = vadd.f32 %v847_v44, %v846_v8 }
 0x259   : > { %1350 = vtanh.f32 %v1776_v46 }
 0x263   : > { %v1351_v50 = vpop.eup %1350 }
 0x264   : > { %v850_v52 = vmul.f32 %v1351_v50, %v1349_v48 }
 0x266   : > { %v858_v62 = vpack.c.bf16 %v850_v52, %v850_v52 }
 0x268   : > { %892 = vmatmul.mubr.bf16.vlgmr.msra.gmra.mrb[16].mxu0 %v858_v62  ;;  %933 = vmatmul.mubr.bf16.vlgmr.msra.gmra.mrb[16].mxu1 %v858_v62 }
 0x269   : > { %978 = vmatpush1.bf16.msra.mxu0 %v1570_v13  ;;  %1019 = vmatpush1.bf16.msra.mxu1 %v1572_v14 }
 0x26a   : > { %979 = vmatprep.subr.bf16.mxu0 %v1575_v15  ;;  %1020 = vmatprep.subr.bf16.mxu1 %v1578_v16  ;;  %v1870_v15 = vld [vmem:[#allocation11_spill] sm:$0xff] }
 0x26b   : > { %1009 = vmatprep.mubr.bf16.mxu0 %v1869_v0  ;;  %1050 = vmatprep.mubr.bf16.mxu1 %v1869_v0 }
 0x26d   : > { %980 = vmatpush1.bf16.msra.mxu0 %v1582_v17  ;;  %1021 = vmatpush1.bf16.msra.mxu1 %v1586_v18  ;;  %v1871_v17 = vld [vmem:[#allocation12_spill] sm:$0xff] }
 0x26e   : > { %981 = vmatprep.subr.bf16.mxu0 %v1590_v19  ;;  %1022 = vmatprep.subr.bf16.mxu1 %v1592_v20 }
 0x271   : > { %982 = vmatpush1.bf16.msra.mxu0 %v1598_v21  ;;  %1023 = vmatpush1.bf16.msra.mxu1 %v1600_v22  ;;  %v1872_v21 = vld [vmem:[#allocation13_spill] sm:$0xff] }
 0x272   : > { %983 = vmatprep.subr.bf16.mxu0 %v1602_v23  ;;  %1024 = vmatprep.subr.bf16.mxu1 %v1606_v24  ;;  %v1873_v23 = vld [vmem:[#allocation14_spill] sm:$0xff] }
 0x275   : > { %984 = vmatpush1.bf16.msra.mxu0 %v1608_v25  ;;  %1025 = vmatpush1.bf16.msra.mxu1 %v1610_v26 }
 0x276   : > { %985 = vmatprep.subr.bf16.mxu0 %v1614_v27  ;;  %1026 = vmatprep.subr.bf16.mxu1 %v1618_v28 }
 0x279   : > { %986 = vmatpush1.bf16.msra.mxu0 %v1621_v30  ;;  %1027 = vmatpush1.bf16.msra.mxu1 %v1625_v31 }
 0x27a   : > { %987 = vmatprep.subr.bf16.mxu0 %v1629_v32  ;;  %1028 = vmatprep.subr.bf16.mxu1 %v1631_v33 }
 0x27d   : > { %988 = vmatpush1.bf16.msra.mxu0 %v1639_v34  ;;  %1029 = vmatpush1.bf16.msra.mxu1 %v1641_v35 }
 0x27e   : > { %989 = vmatprep.subr.bf16.mxu0 %v1645_v36  ;;  %1030 = vmatprep.subr.bf16.mxu1 %v1647_v37 }
 0x281   : > { %990 = vmatpush1.bf16.msra.mxu0 %v1651_v38  ;;  %1031 = vmatpush1.bf16.msra.mxu1 %v1653_v39 }
 0x282   : > { %991 = vmatprep.subr.bf16.mxu0 %v1657_v40  ;;  %1032 = vmatprep.subr.bf16.mxu1 %v1659_v41 }
 0x285   : > { %992 = vmatpush1.bf16.msra.mxu0 %v1663_v42  ;;  %1033 = vmatpush1.bf16.msra.mxu1 %v1665_v43 }
 0x33b   : > { %v893_v13 = vpop.f32.mrb[16].mxu0  ;;  %v934_v14 = vpop.f32.mrb[16].mxu1 }
 0x33c   : > { %v941_v16 = vadd.f32 %v893_v13, %v1870_v15  ;;  %v943_v18 = vadd.f32 %v934_v14, %v1871_v17  ;;  %v895_v19 = vpop.f32.mrb[17].mxu0  ;;  %v936_v20 = vpop.f32.mrb[17].mxu1 }
 0x33d   : > { %v942_v22 = vadd.f32 %v895_v19, %v1872_v21  ;;  %v944_v24 = vadd.f32 %v936_v20, %v1873_v23  ;;  %v897_v25 = vpop.f32.mrb[18].mxu0  ;;  %v938_v26 = vpop.f32.mrb[18].mxu1 }
 0x33e   : > { %v1217_v27 = vmul.f32 -1.442695, %v941_v16  ;;  %v898_v28 = vpop.f32.mrb[19].mxu0  ;;  %v939_v30 = vpop.f32.mrb[19].mxu1 }
 0x33f   : > { %v1218_v31 = vmul.f32 -1.442695, %v942_v22  ;;  %v1219_v32 = vmul.f32 -1.442695, %v944_v24 }
 0x340   : > { %1352 = vpow2.f32 %v1217_v27 }
 0x341   : > { %1354 = vpow2.f32 %v1218_v31 }
 0x342   : > { %1356 = vpow2.f32 %v1219_v32 }
 0x343   : > { %1358 = vtanh.f32 %v943_v18 }
 0x34a   : > { %v1353_v33 = vpop.eup %1352 }
 0x34b   : > { %v1355_v34 = vpop.eup %1354  ;;  %v948_v35 = vadd.f32 1.0, %v1353_v33 }
 0x34c   : > { %v954_v36 = vadd.f32 1.0, %v1355_v34  ;;  %v1357_v37 = vpop.eup %1356 }
 0x34d   : > { %1360 = vrcp.f32 %v948_v35  ;;  %v1359_v38 = vpop.eup %1358  ;;  %v961_v42 = vadd.f32 1.0, %v1357_v37 }
 0x34e   : > { %1362 = vrcp.f32 %v954_v36 }
 0x34f   : > { %1364 = vrcp.f32 %v961_v42 }
 0x357   : > { %v1361_v39 = vpop.eup %1360 }
 0x358   : > { %v1363_v40 = vpop.eup %1362  ;;  %v965_v41 = vmul.f32 %v1361_v39, %v1359_v38 }
 0x359   : > { %v964_v43 = vmul.f32 %v1363_v40, %v1776_v46  ;;  %v1365_v0 = vpop.eup %1364 }
 0x35b   : > { %v966_v51 = vadd.f32 %v965_v41, %v964_v43 }
 0x35d   : > { %1366 = vtanh.f32 %v966_v51 }
 0x367   : > { %v1367_v2 = vpop.eup %1366 }
 0x368   : > { %v968_v6 = vmul.f32 %v1367_v2, %v1365_v0 }
 0x36a   : > { %v976_v7 = vpack.c.bf16 %v968_v6, %v968_v6 }
 0x36c   : > { %1010 = vmatmul.mubr.bf16.vlgmr.msra.gmra.mrb[20].mxu0 %v976_v7  ;;  %1051 = vmatmul.mubr.bf16.vlgmr.msra.gmra.mrb[20].mxu1 %v976_v7 }
 0x43f   : > { %v1011_v9 = vpop.f32.mrb[20].mxu0  ;;  %v1052_v29 = vpop.f32.mrb[20].mxu1 }
 0x440   : > { %v1059_v47 = vadd.f32 %v1011_v9, %v1874_v45  ;;  %v1061_v53 = vadd.f32 %v1052_v29, %v1875_v49  ;;  %v1013_v54 = vpop.f32.mrb[21].mxu0  ;;  %v1054_v55 = vpop.f32.mrb[21].mxu1 }
 0x441   : > { %v1060_v57 = vadd.f32 %v1013_v54, %v1876_v56  ;;  %v1062_v11 = vadd.f32 %v1054_v55, %v1732_v61  ;;  %v1015_v12 = vpop.f32.mrb[22].mxu0  ;;  %v1056_v58 = vpop.f32.mrb[22].mxu1 }
 0x442   : > { %v1220_v59 = vmul.f32 -1.442695, %v1059_v47  ;;  %v1016_v63 = vpop.f32.mrb[23].mxu0  ;;  %v1057_v1 = vpop.f32.mrb[23].mxu1 }
 0x443   : > { %v1221_v4 = vmul.f32 -1.442695, %v1060_v57  ;;  %v1222_v60 = vmul.f32 -1.442695, %v1062_v11 }
 0x444   : > { %1368 = vpow2.f32 %v1220_v59 }
 0x445   : > { %1370 = vpow2.f32 %v1221_v4 }
 0x446   : > { %1372 = vpow2.f32 %v1222_v60 }
 0x447   : > { %1374 = vtanh.f32 %v1061_v53 }
 0x44e   : > { %v1369_v5 = vpop.eup %1368 }
 0x44f   : > { %v1371_v10 = vpop.eup %1370  ;;  %v1066_v44 = vadd.f32 1.0, %v1369_v5 }
 0x450   : > { %v1072_v3 = vadd.f32 1.0, %v1371_v10  ;;  %v1373_v8 = vpop.eup %1372 }
 0x451   : > { %1376 = vrcp.f32 %v1066_v44  ;;  %v1375_v46 = vpop.eup %1374  ;;  %v1079_v52 = vadd.f32 1.0, %v1373_v8 }
 0x452   : > { %1378 = vrcp.f32 %v1072_v3 }
 0x453   : > { %1380 = vrcp.f32 %v1079_v52 }
 0x45b   : > { %v1377_v61 = vpop.eup %1376 }
 0x45c   : > { %v1379_v48 = vpop.eup %1378  ;;  %v1083_v50 = vmul.f32 %v1377_v61, %v1375_v46 }
 0x45d   : > { %v1082_v62 = vmul.f32 %v1379_v48, %v966_v51  ;;  %v1381_v14 = vpop.eup %1380 }
 0x45f   : > { %v1084_v13 = vadd.f32 %v1083_v50, %v1082_v62 }
 0x461   : > { %1382 = vtanh.f32 %v1084_v13  ;;  %1088 = vst [vmem:[#allocation4] sm:$0xff] %v1084_v13 }
 0x468   : > { %1092 = sbr.rel (%p1223_p4) target bundleno = 1143 (0x477), region = 48 }
 0x46b   : > { %v1383_v15 = vpop.eup %1382 }
 0x46c   : > { %v1086_v16 = vmul.f32 %v1383_v15, %v1381_v14 }
 0x46e   : > { %1087 = vst [vmem:[#allocation3] sm:$0xff] %v1086_v16 }
 0x475   : > { %v1093_v17 = vld [vmem:[#allocation3] sm:$0xff] }
 0x476   : > { %1094 = vst [vmem:[#allocation8] sm:$0xff] %v1093_v17 }
 0x477 PF: > { %p1242_p6 = scmp.eq.s32.totalorder %s1491_s16, 3  ;;  %s1459_s6 = smov [#allocation8]  }
 0x478   : > { %s1102_s7 = sshll.u32 %s1459_s6, 4  ;;  %s1103_s7 = int_to_ptr.vmem [resolvable:$true] %s1102_s7 }
 0x479   : > { %s1412_s8 = scalar_lea.vmem %s1103_s7, 128  ;;  %p1419_p13 = scmp.lt.s32.totalorder %s1103_s7, %s1103_s7 }
 0x47a   : > { %p1413_p10 = scmp.ne.s32.totalorder %s1103_s7, %s1412_s8  ;;  %p1420_p0 = scmp.lt.s32.totalorder %s1412_s8, %s1412_s8 }
 0x47c   : > { %p1414_p11 = pnand %p1413_p10, %p1242_p6  ;;  %p1421_p1 = por %p1420_p0, %p1419_p13 }
 0x47e   : > { %p1415_p12 = pneg %p1414_p11 }
 0x480   : > { %p1422_p5 = pnand %p1421_p1, %p1415_p12 }
 0x482   : > { %1425 = shalt.err (!%p1422_p5)
}
 0x483   : > { %s1426_s11 = scalar_lea.hbm %s1851_s4, 128 }
 0x484   : > { %p1427_p7 = scmp.ne.s32.totalorder %s1851_s4, %s1426_s11  ;;  %p1432_p2 = scmp.lt.u32.totalorder %s1426_s11, %s1851_s4 }
 0x486   : > { %p1428_p9 = pnand %p1427_p7, %p1242_p6 }
 0x488   : > { %p1429_p8 = pneg %p1428_p9 }
 0x48a   : > { %p1434_p3 = pnand %p1432_p2, %p1429_p8 }
 0x48c   : > { %1437 = shalt.err (!%p1434_p3)
}
 0x48d   : > { %1233 = dma.vmem_to_hbm [thread:$0]  (%p1242_p6), %s1103_s7, 128, %s1851_s4, [#allocation7]  }
 0x48e   : > { %1447 = dma.done.wait (%p1242_p6), [#allocation7], 128  }
 0x48f   : > { %1449 = vsyncadd (%p1242_p6), [#allocation7], 4294967168 }
 0x490 PF: > { %s16_s15 = sadd.s32 1, %s1452_s15  }
 0x491   : > { %p13_p4 = scmp.ge.s32.totalorder %s16_s15, 6  }
 0x493   :  { %15 = sbr.rel (!%p13_p4) target bundleno = 2 (0x2), region = 80 }
 0x49a   :  { %1115 = vsyncpa [#allocation6], 1 }
 0x49b   :  { %1117 = vsyncpa [#allocation6 + $0x1], 1 }
 0x49c   :  { %1118 = vsyncpa [#allocation7], 1 }
 0x49d   :  { %1120 = vsyncpa [#allocation7 + $0x1], 1 }

</bundles_post_ra>
